<compile_context>
chip_gen: v6e
topology: v6e:2x2x1
jax: 0.10.0
libtpu: 0.0.40
codegen_flags: <defaults>
</compile_context>

<pallas_src>
import functools

import jax
import jax.numpy as jnp
from jax.experimental import pallas as pl
from jax.experimental.pallas import tpu as pltpu

HIDDEN = 16
OUT = 5
DROP_P = 0.3
# Python ints/floats only (jaxpr literals) -- never captured array constants.
DROP_THRESHOLD_U8 = int(round(DROP_P * 256))   # 77: drop iff uint8 bits < 77
KEEP_SCALE = 1.0 / (1.0 - DROP_P)


def _round_up(n, m):
    return ((n + m - 1) // m) * m


def mlp_kernel(*refs, training):
    if training:
        bits_ref, x_ref, w1_ref, b1_ref, w2_ref, b2_ref, o_ref = refs
    else:
        x_ref, w1_ref, b1_ref, w2_ref, b2_ref, o_ref = refs

    # First linear: [TB, F] @ [F, 16] + [1, 16]  (f32 accumulation on the MXU)
    h = jnp.dot(x_ref[...], w1_ref[...], preferred_element_type=jnp.float32)
    h = h + b1_ref[...].astype(jnp.float32)

    if training:
        # Dropout(p=0.3): drop iff uniform uint8 < 77; kept units scaled by 1/(1-p).
        # Pure integer compare against a Python-int literal (no captured constant).
        keep = bits_ref[...] >= DROP_THRESHOLD_U8
        h = jnp.where(keep, h * KEEP_SCALE, 0.0)
    # (eval mode: dropout is identity)

    # ReLU
    h = jnp.maximum(h, 0.0)

    # Second linear: [TB, 16] @ [16, 5] + [1, 5]
    y = jnp.dot(h, w2_ref[...].astype(jnp.float32),
                preferred_element_type=jnp.float32)
    y = y + b2_ref[...].astype(jnp.float32)
    o_ref[...] = y.astype(o_ref.dtype)


def mlp_forward(x, w1, b1, w2, b2, *, training=False, rng_key=None,
                vmem_limit_bytes=32 * 1024 * 1024):
    B, F = x.shape
    assert w1.shape == (F, HIDDEN) and w2.shape == (HIDDEN, OUT)
    out_dtype = x.dtype
    itemsize = jnp.dtype(x.dtype).itemsize

    if training and rng_key is None:
        raise ValueError("training=True requires an explicit rng_key "
                         "(silently reusing a fixed key would repeat dropout masks).")

    # ---- Batch-tile sizing (kernel is HBM-bytes / grid-step-overhead bound) ----
    # Target >= 1 MiB of x per grid step so the ~0.35 us/step overhead is amortized.
    target_step_bytes = 1 << 20
    # Keep the double-buffered streaming inputs (x + uint8 bits) well inside the
    # scoped VMEM limit on every generation (v5e 16 MiB default, v7x 64 MiB physical).
    stream_budget = 12 * 1024 * 1024
    bytes_per_row = F * itemsize + (HIDDEN if training else 0)   # bits are uint8
    tile_b = max(512, target_step_bytes // max(1, F * itemsize))
    tile_b = min(tile_b, 8192, max(8, stream_budget // (2 * bytes_per_row)))
    tile_b = min(tile_b, _round_up(B, 8))            # never (much) bigger than batch
    if B >= 16:
        # v7x has 2 TensorCores: guarantee >= 2 grid steps so "parallel" splits work.
        tile_b = min(tile_b, _round_up((B + 1) // 2, 8))
    tile_b = max(8, _round_up(tile_b, 8))

    # cdiv grid; the ragged tail block is masked by Pallas on store (no jnp.pad pass).
    grid = (pl.cdiv(B, tile_b),)
    kernel = functools.partial(mlp_kernel, training=training)

    in_specs = [
        pl.BlockSpec((tile_b, F), lambda i: (i, 0)),          # x tile (streamed)
        pl.BlockSpec((F, HIDDEN), lambda i: (0, 0)),          # w1 (VMEM-resident)
        pl.BlockSpec((1, HIDDEN), lambda i: (0, 0)),          # b1
        pl.BlockSpec((HIDDEN, OUT), lambda i: (0, 0)),        # w2
        pl.BlockSpec((1, OUT), lambda i: (0, 0)),             # b2
    ]
    args = [x, w1, b1.reshape(1, HIDDEN), w2, b2.reshape(1, OUT)]

    bytes_accessed = (B * F * itemsize                         # x read
                      + B * OUT * jnp.dtype(out_dtype).itemsize  # out write
                      + (F * HIDDEN + HIDDEN) * jnp.dtype(w1.dtype).itemsize
                      + (HIDDEN * OUT + OUT) * jnp.dtype(w2.dtype).itemsize)
    if training:
        # Independent uniform uint8 per (row, hidden unit); tiled like x, so every
        # batch tile automatically gets a distinct dropout mask.
        bits = jax.random.bits(rng_key, (B, HIDDEN), dtype=jnp.uint8)
        in_specs = [pl.BlockSpec((tile_b, HIDDEN), lambda i: (i, 0))] + in_specs
        args = [bits] + args
        bytes_accessed += B * HIDDEN  # 1 byte per bit-draw

    return pl.pallas_call(
        kernel,
        out_shape=jax.ShapeDtypeStruct((B, OUT), out_dtype),
        grid=grid,
        in_specs=in_specs,
        out_specs=pl.BlockSpec((tile_b, OUT), lambda i: (i, 0)),
        compiler_params=pltpu.CompilerParams(
            dimension_semantics=("parallel",),      # batch tiles split across v7x's 2 TCs
            vmem_limit_bytes=int(vmem_limit_bytes),
        ),
        cost_estimate=pl.CostEstimate(
            flops=2 * B * (F * HIDDEN + HIDDEN * OUT),
            transcendentals=0,
            bytes_accessed=int(bytes_accessed),
        ),
    )(*args)


def init_params(key, in_features):
    # Deterministic synthetic init (same shapes as nn.Linear; values arbitrary).
    # Weights stored transposed vs. PyTorch as [in, out] so the kernel computes
    # plain row-major x @ W1 @ W2.
    k1, k2, k3, k4 = jax.random.split(key, 4)
    bound1 = 1.0 / jnp.sqrt(in_features)
    bound2 = 1.0 / jnp.sqrt(HIDDEN)
    w1 = jax.random.uniform(k1, (in_features, HIDDEN), jnp.float32, -bound1, bound1)
    b1 = jax.random.uniform(k2, (HIDDEN,), jnp.float32, -bound1, bound1)
    w2 = jax.random.uniform(k3, (HIDDEN, OUT), jnp.float32, -bound2, bound2)
    b2 = jax.random.uniform(k4, (OUT,), jnp.float32, -bound2, bound2)
    return w1, b1, w2, b2


def mlp_reference(x, w1, b1, w2, b2):
    # Pure-JAX reference (eval mode: dropout = identity).
    h = jnp.maximum(x @ w1 + b1, 0.0)
    return h @ w2 + b2


if __name__ == "__main__":
    key = jax.random.PRNGKey(0)
    kx, kp, kd, kx2 = jax.random.split(key, 4)

    batch, in_features = 8, 32
    x = jax.random.normal(kx, (batch, in_features), dtype=jnp.float32)
    w1, b1, w2, b2 = init_params(kp, in_features)

    # Eval-mode forward (deterministic; dropout is identity).
    # Loose tolerance so the check also holds under default MXU f32 precision.
    out = jax.block_until_ready(mlp_forward(x, w1, b1, w2, b2, training=False))
    ref = mlp_reference(x, w1, b1, w2, b2)
    assert out.shape == (batch, OUT)
    assert jnp.allclose(out, ref, atol=2e-2, rtol=2e-2)

    # Training-mode forward (stochastic dropout; per-tile independent uint8 masks).
    out_train = jax.block_until_ready(
        mlp_forward(x, w1, b1, w2, b2, training=True, rng_key=kd))
    assert out_train.shape == (batch, OUT)
    assert bool(jnp.all(jnp.isfinite(out_train)))

    # Larger, non-tile-divisible batch: exercises the cdiv grid (>= 2 tiles for the
    # 2-TC split) and the masked ragged-tail store — no wrapper-side jnp.pad pass.
    batch2 = 200
    x2 = jax.random.normal(kx2, (batch2, in_features), dtype=jnp.float32)
    out2 = jax.block_until_ready(mlp_forward(x2, w1, b1, w2, b2, training=False))
    ref2 = mlp_reference(x2, w1, b1, w2, b2)
    assert out2.shape == (batch2, OUT)
    assert jnp.allclose(out2, ref2, atol=2e-2, rtol=2e-2)

    print("KERNEL_OK")
</pallas_src>

<mosaic_0001>
module attributes {stable_mosaic.version = 11 : i64} {
  func.func @mlp_kernel(%arg0: i32, %arg1: memref<8x32xf32, #tpu.memory_space<vmem>>, %arg2: memref<32x16xf32, #tpu.memory_space<vmem>>, %arg3: memref<1x16xf32, #tpu.memory_space<vmem>>, %arg4: memref<16x5xf32, #tpu.memory_space<vmem>>, %arg5: memref<1x5xf32, #tpu.memory_space<vmem>>, %arg6: memref<8x5xf32, #tpu.memory_space<vmem>>) attributes {dimension_semantics = [#tpu.dimension_semantics<parallel>], iteration_bounds = array<i64: 1>, scalar_prefetch = 0 : i64, scratch_operands = 0 : i64, tpu.core_type = #tpu.core_type<tc>, window_params = [{transform_indices = @transform_0, window_bounds = array<i64: 8, 32>}, {pipeline_mode = #tpu.pipeline_mode<synchronous>, transform_indices = @transform_1, window_bounds = array<i64: 32, 16>}, {pipeline_mode = #tpu.pipeline_mode<synchronous>, transform_indices = @transform_2, window_bounds = array<i64: 1, 16>}, {pipeline_mode = #tpu.pipeline_mode<synchronous>, transform_indices = @transform_3, window_bounds = array<i64: 16, 5>}, {pipeline_mode = #tpu.pipeline_mode<synchronous>, transform_indices = @transform_4, window_bounds = array<i64: 1, 5>}, {transform_indices = @transform_5, window_bounds = array<i64: 8, 5>}]} {
    %c0 = arith.constant 0 : index
    %c0_0 = arith.constant 0 : index
    %0 = vector.load %arg1[%c0, %c0_0] : memref<8x32xf32, #tpu.memory_space<vmem>>, vector<8x32xf32>
    %c0_1 = arith.constant 0 : index
    %c0_2 = arith.constant 0 : index
    %1 = vector.load %arg2[%c0_1, %c0_2] : memref<32x16xf32, #tpu.memory_space<vmem>>, vector<32x16xf32>
    %cst = arith.constant dense<0.000000e+00> : vector<8x16xf32>
    %2 = tpu.matmul %0, %1, %cst {dimension_numbers = #tpu.dot_dimension_numbers<[1], [0], [0], [1], [0, 0, 1, 1], [], []>} : vector<8x32xf32>, vector<32x16xf32>, vector<8x16xf32> -> vector<8x16xf32>
    %c0_3 = arith.constant 0 : index
    %c0_4 = arith.constant 0 : index
    %3 = vector.load %arg3[%c0_3, %c0_4] : memref<1x16xf32, #tpu.memory_space<vmem>>, vector<1x16xf32>
    %4 = vector.broadcast %3 : vector<1x16xf32> to vector<8x16xf32>
    %5 = arith.addf %2, %4 : vector<8x16xf32>
    %cst_5 = arith.constant 0.000000e+00 : f32
    %6 = vector.broadcast %cst_5 : f32 to vector<8x16xf32>
    %7 = arith.maximumf %5, %6 : vector<8x16xf32>
    %c0_6 = arith.constant 0 : index
    %c0_7 = arith.constant 0 : index
    %8 = vector.load %arg4[%c0_6, %c0_7] : memref<16x5xf32, #tpu.memory_space<vmem>>, vector<16x5xf32>
    %cst_8 = arith.constant dense<0.000000e+00> : vector<8x5xf32>
    %9 = tpu.matmul %7, %8, %cst_8 {dimension_numbers = #tpu.dot_dimension_numbers<[1], [0], [0], [1], [0, 0, 1, 1], [], []>} : vector<8x16xf32>, vector<16x5xf32>, vector<8x5xf32> -> vector<8x5xf32>
    %c0_9 = arith.constant 0 : index
    %c0_10 = arith.constant 0 : index
    %10 = vector.load %arg5[%c0_9, %c0_10] : memref<1x5xf32, #tpu.memory_space<vmem>>, vector<1x5xf32>
    %11 = vector.broadcast %10 : vector<1x5xf32> to vector<8x5xf32>
    %12 = arith.addf %9, %11 : vector<8x5xf32>
    %c0_11 = arith.constant 0 : index
    %c0_12 = arith.constant 0 : index
    %13 = vector.load %arg6[%c0_11, %c0_12] : memref<8x5xf32, #tpu.memory_space<vmem>>, vector<8x5xf32>
    tpu.vector_store %arg6[%c0_11, %c0_12], %12 {strides = array<i32>} : memref<8x5xf32, #tpu.memory_space<vmem>>, vector<8x5xf32>,
    return
  }
  func.func @transform_0(%arg0: i32) -> (i32, i32) {
    %c0_i32 = arith.constant 0 : i32
    %c0_i32_0 = arith.constant 0 : i32
    return %arg0, %c0_i32 : i32, i32
  }
  func.func @transform_1(%arg0: i32) -> (i32, i32) {
    %c0_i32 = arith.constant 0 : i32
    %c0_i32_0 = arith.constant 0 : i32
    %c0_i32_1 = arith.constant 0 : i32
    return %c0_i32, %c0_i32_0 : i32, i32
  }
  func.func @transform_2(%arg0: i32) -> (i32, i32) {
    %c0_i32 = arith.constant 0 : i32
    %c0_i32_0 = arith.constant 0 : i32
    %c0_i32_1 = arith.constant 0 : i32
    return %c0_i32, %c0_i32_0 : i32, i32
  }
  func.func @transform_3(%arg0: i32) -> (i32, i32) {
    %c0_i32 = arith.constant 0 : i32
    %c0_i32_0 = arith.constant 0 : i32
    %c0_i32_1 = arith.constant 0 : i32
    return %c0_i32, %c0_i32_0 : i32, i32
  }
  func.func @transform_4(%arg0: i32) -> (i32, i32) {
    %c0_i32 = arith.constant 0 : i32
    %c0_i32_0 = arith.constant 0 : i32
    %c0_i32_1 = arith.constant 0 : i32
    return %c0_i32, %c0_i32_0 : i32, i32
  }
  func.func @transform_5(%arg0: i32) -> (i32, i32) {
    %c0_i32 = arith.constant 0 : i32
    %c0_i32_0 = arith.constant 0 : i32
    return %arg0, %c0_i32 : i32, i32
  }
}

</mosaic_0001>

<bundles_post_ra>
// kernel: tpu_custom_call.1
= control target key start
LH: loop header
LB: loop body
LE: loop exit
PB: predicated region body
PF: predicated region fallthrough
CT: control target
= control target key end

     0   :  { %v262_v1 = vmov 0.0   ;;  %vm263_vm0 = vmmov 0   ;;  %s325_s0 = inlined_call_operand.vmem [shape: f32[8,32], index: 0, kind: input, shape index: {}]   ;;  %s326_s1 = inlined_call_operand.vmem [shape: f32[32,16], index: 1, kind: input, shape index: {}]   ;;  %s327_s2 = inlined_call_operand.vmem [shape: f32[1,16], index: 2, kind: input, shape index: {}]   ;;  %s328_s3 = inlined_call_operand.vmem [shape: f32[16,5], index: 3, kind: input, shape index: {}]   ;;  %s329_s4 = inlined_call_operand.vmem [shape: f32[1,5], index: 4, kind: input, shape index: {}]   ;;  %s330_s5 = inlined_call_operand.hbm [shape: f32[8,5], index: 5, kind: output, shape index: {}]  }
   0x1   :  { %v25_v0 = vld [vmem:[%s326_s1 + $0x18] sm:$0xff]  ;;  %219 = vmatprep.subr.mxu0 %v262_v1  ;;  %v24_v2 = vld [vmem:[%s326_s1 + $0x10] sm:$0xff]  ;;  %227 = vmatprep.mubr.msk.f32.mxu0 %vm263_vm0, %v262_v1 }
   0x2   :  { %220 = vmatpush3.msra.mxu0 %v25_v0  ;;  %230 = vmatprep.subr.mxu1 %v262_v1 }
   0x3   :  { %10 = vsyncpa [#allocation3], 0  ;;  %221 = vmatprep.subr.mxu0 %v262_v1  ;;  %v23_v3 = vld [vmem:[%s326_s1 + $0x8] sm:$0xff]  ;;  %234 = vmatprep.mubr.msk.f32.mxu1 %vm263_vm0, %v262_v1  ;;  %v22_v4 = vld [vmem:[%s326_s1] sm:$0xff]  ;;  %vm33_vm1 = vcmask 261120   ;;  %vm117_vm2 = vcmask 130048  }
   0x4   :  { %222 = vmatpush3.msra.mxu0 %v24_v2  ;;  %v21_v5 = vld [vmem:[%s325_s0] sm:$0xff]  ;;  %v109_v6 = vld [vmem:[%s328_s3 + $0x8] sm:$0xff]  ;;  %s264_s9 = smov [#allocation2]   ;;  %vm191_vm3 = vcmask 39936  }
   0x5   :  { %223 = vmatprep.subr.mxu0 %v262_v1  ;;  %231 = vmatpush3.msra.mxu1 %v109_v6  ;;  %v108_v7 = vld [vmem:[%s328_s3] sm:$0xff]  ;;  %s199_s10 = sshll.u32 %s264_s9, 4  ;;  %s200_s10 = int_to_ptr.vmem [resolvable:$true] %s199_s10 }
   0x6   :  { %224 = vmatpush3.msra.mxu0 %v23_v3  ;;  %232 = vmatprep.subr.mxu1 %v262_v1  ;;  %v207_v8 = vld [vmem:[%s327_s2] ss:$0 sm:$0xff]  ;;  %s240_s3 = scalar_lea.vmem %s200_s10, 128  ;;  %p245_p1 = scmp.lt.s32.totalorder %s200_s10, %s200_s10 }
   0x7   :  { %225 = vmatprep.subr.mxu0 %v262_v1  ;;  %233 = vmatpush3.msra.mxu1 %v108_v7  ;;  %v209_v13 = vld [vmem:[%s329_s4] ss:$0 sm:$0xff]  ;;  %p241_p0 = scmp.ne.s32.totalorder %s200_s10, %s240_s3  ;;  %p246_p2 = scmp.lt.s32.totalorder %s240_s3, %s240_s3 }
   0x8   :  { %226 = vmatpush3.msra.mxu0 %v22_v4 }
   0x9   :  { %228 = vmatmul.mubr.msk.f32.vlgmr.msra.gmra.mxu0 %vm33_vm1, %v21_v5  ;;  %p247_p3 = por %p246_p2, %p245_p1 }
   0xb   :  { %p248_p4 = pnand %p247_p3, %p241_p0 }
  0xc9   :  { %v103_v9 = vpop.f32.mrf.mxu0 }
  0xca   :  { %v104_v10 = vadd.f32 %v207_v8, %v103_v9 }
  0xcb   :  { %v229_v11 = vpop.f32.mrf.mxu0 }
  0xcc   :  { %v107_v12 = vmax.f32 %v104_v10, 0.0 }
  0xce   :  { %235 = vmatmul.mubr.msk.f32.vlgmr.msra.gmra.mxu1 %vm117_vm2, %v107_v12 }
 0x18e   :  { %v187_v14 = vpop.f32.mrf.mxu1 }
 0x18f   :  { %v188_v15 = vadd.f32 %v209_v13, %v187_v14 }
 0x190   :  { %v236_v16 = vpop.f32.mrf.mxu1 }
 0x191   :  { %192 = vst.msk [vmem:[#allocation2] sm:$0xff] %vm191_vm3, %v188_v15 }
 0x192   :  { %251 = shalt.err (!%p248_p4)
}
 0x193   :  { %202 = dma.vmem_to_hbm [thread:$0]  %s200_s10, 128, %s330_s5, [#allocation3]  }
 0x194   :  { %260 = dma.done.wait [#allocation3], 128  }
 0x195   :  { %261 = vsyncadd [#allocation3], 4294967168 }
 0x196   :  { %206 = vsyncpa [#allocation3], 1 }

</bundles_post_ra>
